<compile_context>
chip_gen: v7x
topology: tpu7x:2x2x1
jax: 0.10.0
libtpu: 0.0.40
codegen_flags: <defaults>
</compile_context>

<pallas_src>
import math

import jax
import jax.numpy as jnp
from jax.experimental import pallas as pl
from jax.experimental.pallas import tpu as pltpu

# Mixed-precision training weight dtype (the torch module takes weight_dtype;
# bf16 is the standard SDXL/TPU choice and is MXU-native).
WEIGHT_DTYPE = jnp.bfloat16
NUM_TRAIN_TIMESTEPS = 1000


# --------------------------------------------------------------------------
# Kernel 1: fused sinusoidal embedding  emb = [cos(args), sin(args)]
#   All timestep-like scalars of the whole forward are stacked into a single
#   (N_total, half) argument block -> one launch instead of five.
# --------------------------------------------------------------------------
def _sincos_kernel(args_ref, out_ref):
    half = args_ref.shape[-1]
    a = args_ref[...]
    out_ref[:, :half] = jnp.cos(a)
    out_ref[:, half:] = jnp.sin(a)


def fused_sincos_embedding(t_all, dim=256, max_period=10000.0):
    """One Pallas launch computing [cos, sin] embeddings for all scalars."""
    n = int(t_all.shape[0])
    half = dim // 2
    n_pad = max(8, ((n + 7) // 8) * 8)  # pad rows to a multiple of 8 sublanes

    t_pad = jnp.zeros((n_pad,), jnp.float32).at[:n].set(t_all.astype(jnp.float32))
    freqs = jnp.exp(
        -math.log(max_period) * jnp.arange(half, dtype=jnp.float32) / half
    )
    # Precompute the (n_pad, half) broadcast outside the kernel (tiny, fused by XLA).
    args = t_pad[:, None] * freqs[None, :]

    emb = pl.pallas_call(
        _sincos_kernel,
        out_shape=jax.ShapeDtypeStruct((n_pad, dim), jnp.float32),
        grid=(1,),
        in_specs=[pl.BlockSpec((n_pad, half), lambda i: (0, 0))],
        out_specs=pl.BlockSpec((n_pad, dim), lambda i: (0, 0)),
    )(args)
    return emb[:n]


# --------------------------------------------------------------------------
# Kernel 2: DDPM add_noise
#   noisy = sqrt(ac[t]) * latents + sqrt(1 - ac[t]) * noise
#   Lane-dense per-batch (rows, lanes) tiles; scales read from SMEM; output
#   emitted directly in WEIGHT_DTYPE (what the matmul consumes).
# --------------------------------------------------------------------------
def _add_noise_kernel(sa_ref, so_ref, lat_ref, noise_ref, out_ref):
    b = pl.program_id(0)
    sa = sa_ref[b]
    so = so_ref[b]
    out_ref[...] = (
        sa * lat_ref[...].astype(jnp.float32)
        + so * noise_ref[...].astype(jnp.float32)
    ).astype(out_ref.dtype)


def _pick_lanes(per):
    # Prefer a large lane width with a sublane-aligned row count.
    for lanes in (4096, 2048, 1024, 512, 256, 128):
        if per % lanes == 0 and (per // lanes) % 8 == 0:
            return lanes
    for lanes in (4096, 2048, 1024, 512, 256, 128):
        if per % lanes == 0:
            return lanes
    return per  # fall back to (B, 1, per); block == full dims is still legal


def add_noise(latents, noise, sqrt_ac, sqrt_om):
    """latents/noise: (B, C, H, W) in their upstream dtype; returns WEIGHT_DTYPE."""
    B = int(latents.shape[0])
    per = 1
    for d in latents.shape[1:]:
        per *= int(d)
    lanes = _pick_lanes(per)
    rows = per // lanes

    lat = latents.reshape(B, rows, lanes)
    nz = noise.reshape(B, rows, lanes)

    out = pl.pallas_call(
        _add_noise_kernel,
        out_shape=jax.ShapeDtypeStruct((B, rows, lanes), WEIGHT_DTYPE),
        grid=(B,),
        in_specs=[
            pl.BlockSpec(memory_space=pltpu.MemorySpace.SMEM),
            pl.BlockSpec(memory_space=pltpu.MemorySpace.SMEM),
            pl.BlockSpec((1, rows, lanes), lambda b: (b, 0, 0)),
            pl.BlockSpec((1, rows, lanes), lambda b: (b, 0, 0)),
        ],
        out_specs=pl.BlockSpec((1, rows, lanes), lambda b: (b, 0, 0)),
        compiler_params=pltpu.CompilerParams(dimension_semantics=("parallel",)),
    )(sqrt_ac.astype(jnp.float32), sqrt_om.astype(jnp.float32), lat, nz)
    return out.reshape(latents.shape)


# --------------------------------------------------------------------------
# Kernel 3: UNet surrogate hot path  out = x @ W_spatial + bias_per_row
# Tiled bf16 MXU matmul with f32 accumulation.
# TODO(synk): the real SDXL UNet (resnet blocks + cross attention) is an
# external nn.Module; this is a deterministic conditioned linear surrogate
# with matching I/O shapes.
# --------------------------------------------------------------------------
def _unet_kernel(x_ref, w_ref, bias_ref, out_ref, acc_ref):
    k = pl.program_id(2)

    @pl.when(k == 0)
    def _():
        acc_ref[...] = jnp.zeros_like(acc_ref)

    acc_ref[...] += jnp.dot(
        x_ref[...], w_ref[...], preferred_element_type=jnp.float32
    )

    @pl.when(k == pl.num_programs(2) - 1)
    def _():
        # bias_ref is (tm, 128) with every lane holding the per-row bias;
        # take lane 0 and broadcast over the tn output lanes.
        bias_col = bias_ref[...][:, :1]
        out_ref[...] = (acc_ref[...] + bias_col).astype(out_ref.dtype)


def _pick_tile(dim, cap=512):
    """Largest multiple of 128 <= cap dividing dim (or the full dim)."""
    if dim <= cap:
        return dim
    t = (cap // 128) * 128
    while t >= 128:
        if dim % t == 0:
            return t
        t -= 128
    return dim


def unet_surrogate(x_rows, w_spatial, bias_rows, *, tile_cap=512):
    """x_rows: (R, S); w_spatial: (S, S); bias_rows: (R,)."""
    R, S = int(x_rows.shape[0]), int(x_rows.shape[1])
    tm = R                       # R = B*C is small; push tn/tk instead
    tn = _pick_tile(S, tile_cap)
    tk = _pick_tile(S, tile_cap)

    x_bf = x_rows.astype(jnp.bfloat16)
    w_bf = w_spatial.astype(jnp.bfloat16)   # bf16 inputs, f32 accumulation
    bias_lanes = jnp.broadcast_to(
        bias_rows.astype(jnp.float32).reshape(R, 1), (R, 128)
    )

    grid = (R // tm, S // tn, S // tk)
    return pl.pallas_call(
        _unet_kernel,
        out_shape=jax.ShapeDtypeStruct((R, S), WEIGHT_DTYPE),
        grid_spec=pltpu.PrefetchScalarGridSpec(
            num_scalar_prefetch=0,
            grid=grid,
            in_specs=[
                pl.BlockSpec((tm, tk), lambda i, j, k: (i, k)),
                pl.BlockSpec((tk, tn), lambda i, j, k: (k, j)),
                pl.BlockSpec((tm, 128), lambda i, j, k: (i, 0)),
            ],
            out_specs=pl.BlockSpec((tm, tn), lambda i, j, k: (i, j)),
            scratch_shapes=[pltpu.VMEM((tm, tn), jnp.float32)],
        ),
        compiler_params=pltpu.CompilerParams(
            dimension_semantics=("parallel", "parallel", "arbitrary"),
            vmem_limit_bytes=48 * 1024 * 1024,  # safe on v5e/v6e (128M) and v7x (64M)
        ),
    )(x_bf, w_bf, bias_lanes)


# --------------------------------------------------------------------------
# Glue: scheduler, parameters, full forward
# --------------------------------------------------------------------------
def make_alphas_cumprod(num_train_timesteps=NUM_TRAIN_TIMESTEPS):
    # SDXL "scaled_linear" beta schedule.
    betas = jnp.linspace(
        0.00085 ** 0.5, 0.012 ** 0.5, num_train_timesteps, dtype=jnp.float32
    ) ** 2
    return jnp.cumprod(1.0 - betas)


def init_params(key, *, spatial, cond_dim, channels):
    k1, k2 = jax.random.split(key)
    return {
        "alphas_cumprod": make_alphas_cumprod(),
        "w_spatial": jax.random.normal(k1, (spatial, spatial), jnp.float32)
        / jnp.sqrt(jnp.float32(spatial)),
        "w_cond": jax.random.normal(k2, (cond_dim, channels), jnp.float32)
        / jnp.sqrt(jnp.float32(cond_dim)),
    }


def sdxl_pretrain_forward(
    params,
    batch,
    latents,
    encoder_hidden_state1,
    encoder_hidden_state2,
    pool2,
    key,
    *,
    resolution,
):
    B, C, H, W = (int(d) for d in latents.shape)
    S = H * W
    R = B * C

    orig = batch["original_sizes_hw"].astype(jnp.float32)    # (B, 2)
    crop = batch["crop_top_lefts"].astype(jnp.float32)       # (B, 2)
    targ = batch["target_sizes_hw"].astype(jnp.float32)      # (B, 2)

    # compute_time_ids: (orig_hw + crop_tl + target_hw) per sample -> (B, 6)
    time_ids = []
    for s_, c_ in zip(batch["original_sizes"], batch["crop_top_lefts_list"]):
        time_ids.append(
            jnp.asarray(
                [list(s_) + list(c_) + [resolution, resolution]], dtype=jnp.float32
            )
        )
    add_time_ids = jnp.concatenate(time_ids, axis=0)          # (B, 6)

    # noise / timesteps
    k_noise, k_t = jax.random.split(key)
    noise = jax.random.normal(k_noise, latents.shape, dtype=jnp.float32)
    timesteps = jax.random.randint(k_t, (B,), 0, NUM_TRAIN_TIMESTEPS, dtype=jnp.int32)

    # ---- single fused sinusoidal-embedding launch for ALL scalar inputs ----
    scalars = jnp.concatenate(
        [
            orig.reshape(-1),                  # 2B rows  -> size emb 1
            crop.reshape(-1),                  # 2B rows  -> size emb 2
            targ.reshape(-1),                  # 2B rows  -> size emb 3
            timesteps.astype(jnp.float32),     # B rows   -> t_emb
            add_time_ids.reshape(-1),          # 6B rows  -> time-id emb
        ],
        axis=0,
    )
    emb_all = fused_sincos_embedding(scalars, 256)             # (13B, 256) f32

    o = 0
    e1 = emb_all[o:o + 2 * B].reshape(B, 512); o += 2 * B
    e2 = emb_all[o:o + 2 * B].reshape(B, 512); o += 2 * B
    e3 = emb_all[o:o + 2 * B].reshape(B, 512); o += 2 * B
    t_emb = emb_all[o:o + B]; o += B
    tid_emb = emb_all[o:o + 6 * B].reshape(B, 6 * 256); o += 6 * B

    embs = jnp.concatenate([e1, e2, e3], axis=1).astype(WEIGHT_DTYPE)   # (B, 1536)

    # vector_embedding is computed (as in the reference) but not consumed by the unet call
    vector_embedding = jnp.concatenate(
        [pool2.astype(WEIGHT_DTYPE), embs], axis=1
    )
    del vector_embedding

    text_embedding = jnp.concatenate(
        [encoder_hidden_state1, encoder_hidden_state2], axis=2
    ).astype(WEIGHT_DTYPE)

    # ---- DDPM add_noise (Pallas, lane-dense, emits WEIGHT_DTYPE directly) ----
    ac = params["alphas_cumprod"][timesteps]
    noisy_latents = add_noise(latents, noise, jnp.sqrt(ac), jnp.sqrt(1.0 - ac))

    # conditioning for the surrogate unet (small glue projections, f32)
    text_pool = jnp.mean(text_embedding.astype(jnp.float32), axis=1)    # (B, Dt)
    cond = jnp.concatenate(
        [t_emb, tid_emb, text_pool, pool2.astype(jnp.float32)], axis=1
    )                                                                    # (B, Dcond)
    bias = cond @ params["w_cond"]                                       # (B, C)

    pred = unet_surrogate(
        noisy_latents.reshape(R, S),
        params["w_spatial"],
        bias.reshape(R),
    )
    noise_pred = pred.reshape(B, C, H, W)

    return noise_pred, noise, timesteps


if __name__ == "__main__":
    B, C, H, W = 2, 4, 16, 16
    SEQ, H1, H2 = 8, 32, 64
    RESOLUTION = 64

    root = jax.random.PRNGKey(0)
    k_lat, k_e1, k_e2, k_p2, k_params, k_fwd = jax.random.split(root, 6)

    latents = jax.random.normal(k_lat, (B, C, H, W), jnp.float32)
    encoder_hidden_state1 = jax.random.normal(k_e1, (B, SEQ, H1), jnp.float32)
    encoder_hidden_state2 = jax.random.normal(k_e2, (B, SEQ, H2), jnp.float32)
    pool2 = jax.random.normal(k_p2, (B, H2), jnp.float32)

    batch = {
        "original_sizes_hw": jnp.asarray([[64.0, 64.0], [48.0, 64.0]], jnp.float32),
        "crop_top_lefts": jnp.asarray([[0.0, 0.0], [8.0, 4.0]], jnp.float32),
        "target_sizes_hw": jnp.asarray([[64.0, 64.0], [64.0, 64.0]], jnp.float32),
        "original_sizes": [(64, 64), (48, 64)],
        "crop_top_lefts_list": [(0, 0), (8, 4)],
    }

    # t_emb + time_ids emb + pooled text + pool2
    cond_dim = 256 + 6 * 256 + (H1 + H2) + H2
    params = init_params(k_params, spatial=H * W, cond_dim=cond_dim, channels=C)

    noise_pred, noise, timesteps = sdxl_pretrain_forward(
        params,
        batch,
        latents,
        encoder_hidden_state1,
        encoder_hidden_state2,
        pool2,
        k_fwd,
        resolution=RESOLUTION,
    )
    jax.block_until_ready((noise_pred, noise, timesteps))
    assert noise_pred.shape == (B, C, H, W)
    assert noise.shape == (B, C, H, W)
    assert timesteps.shape == (B,)
    assert bool(jnp.isfinite(noise_pred.astype(jnp.float32)).all())
    print("KERNEL_OK")
</pallas_src>

<mosaic_0001>
module attributes {stable_mosaic.version = 11 : i64} {
  func.func @_sincos_kernel(%arg0: i32, %arg1: memref<32x128xf32, #tpu.memory_space<vmem>>, %arg2: memref<32x256xf32, #tpu.memory_space<vmem>>) attributes {dimension_semantics = [#tpu.dimension_semantics<arbitrary>], iteration_bounds = array<i64: 1>, scalar_prefetch = 0 : i64, scratch_operands = 0 : i64, tpu.core_type = #tpu.core_type<tc>, window_params = [{pipeline_mode = #tpu.pipeline_mode<synchronous>, transform_indices = @transform_0, window_bounds = array<i64: 32, 128>}, {pipeline_mode = #tpu.pipeline_mode<synchronous>, transform_indices = @transform_1, window_bounds = array<i64: 32, 256>}]} {
    %c0 = arith.constant 0 : index
    %c0_0 = arith.constant 0 : index
    %0 = vector.load %arg1[%c0, %c0_0] : memref<32x128xf32, #tpu.memory_space<vmem>>, vector<32x128xf32>
    %1 = math.cos %0 : vector<32x128xf32>
    %c0_1 = arith.constant 0 : index
    %c0_2 = arith.constant 0 : index
    %2 = vector.load %arg2[%c0_1, %c0_2] : memref<32x256xf32, #tpu.memory_space<vmem>>, vector<32x128xf32>
    tpu.vector_store %arg2[%c0_1, %c0_2], %1 {strides = array<i32>} : memref<32x256xf32, #tpu.memory_space<vmem>>, vector<32x128xf32>,
    %3 = math.sin %0 : vector<32x128xf32>
    %c0_3 = arith.constant 0 : index
    %c128 = arith.constant 128 : index
    %4 = vector.load %arg2[%c0_3, %c128] : memref<32x256xf32, #tpu.memory_space<vmem>>, vector<32x128xf32>
    tpu.vector_store %arg2[%c0_3, %c128], %3 {strides = array<i32>} : memref<32x256xf32, #tpu.memory_space<vmem>>, vector<32x128xf32>,
    return
  }
  func.func @transform_0(%arg0: i32) -> (i32, i32) {
    %c0_i32 = arith.constant 0 : i32
    %c0_i32_0 = arith.constant 0 : i32
    %c0_i32_1 = arith.constant 0 : i32
    return %c0_i32, %c0_i32_0 : i32, i32
  }
  func.func @transform_1(%arg0: i32) -> (i32, i32) {
    %c0_i32 = arith.constant 0 : i32
    %c0_i32_0 = arith.constant 0 : i32
    %c0_i32_1 = arith.constant 0 : i32
    return %c0_i32, %c0_i32_0 : i32, i32
  }
}

</mosaic_0001>

<bundles_post_ra>
// kernel: tpu_custom_call.1
= control target key start
LH: loop header
LB: loop body
LE: loop exit
PB: predicated region body
PF: predicated region fallthrough
CT: control target
= control target key end

     0   :  { %6 = vsyncpa [#allocation3], 0  ;;  %s1383_s0 = inlined_call_operand.hbm [shape: f32[32,128], index: 0, kind: input, shape index: {}]   ;;  %s1384_s1 = inlined_call_operand.hbm [shape: f32[32,256], index: 1, kind: output, shape index: {}]  }
   0x1   :  { %7 = vsyncpa [#allocation4], 0  ;;  %s1004_s6 = smov [#allocation2]   ;;  %s956_s10 = scalar_lea.hbm %s1383_s0, 512 }
   0x2   :  { %s13_s7 = sshll.u32 %s1004_s6, 4  ;;  %p957_p0 = scmp.ne.s32.totalorder %s1383_s0, %s956_s10  ;;  %s14_s7 = int_to_ptr.vmem [resolvable:$true] %s13_s7 }
   0x3   :  { %p960_p1 = scmp.lt.u32.totalorder %s956_s10, %s1383_s0 }
   0x5   :  { %p962_p2 = pnand %p960_p1, %p957_p0 }
   0x7   :  { %965 = shalt.err (!%p962_p2)
}
   0x8   :  { %s966_s15 = scalar_lea.vmem %s14_s7, 512  ;;  %p971_p4 = scmp.lt.s32.totalorder %s14_s7, %s14_s7 }
   0x9   :  { %p967_p3 = scmp.ne.s32.totalorder %s14_s7, %s966_s15  ;;  %p972_p5 = scmp.lt.s32.totalorder %s966_s15, %s966_s15 }
   0xb   :  { %p973_p6 = por %p972_p5, %p971_p4 }
   0xd   :  { %p974_p7 = pnand %p973_p6, %p967_p3 }
   0xf   :  { %977 = shalt.err (!%p974_p7)
}
  0x10   :  { %s1005_s16 = smov 128   ;;  %s1006_s17 = smov 8  }
  0x11   :  { %19 = dma.hbm_to_vmem [thread:$0]  %s1383_s0, 512, %s14_s7, [#allocation3], %s1005_s16, %s1005_s16, %s1006_s17  }
  0x12   :  { %1000 = dma.done.wait [#allocation3], 512  }
  0x13   :  { %1001 = vsyncadd [#allocation3], 4294966784  ;;  %v1038_v0 = vld [vmem:[#allocation2] sm:$0xff]  ;;  %v1040_v1 = vld [vmem:[#allocation2 + $0x8] sm:$0xff]  ;;  %v1007_v30 = vmov 683565275  }
  0x14   :  { %v27_v2 = vand.u32 2147483647, %v1038_v0  ;;  %v30_v3 = vand.u32 2139095040, %v1038_v0  ;;  %v1044_v4 = vld [vmem:[#allocation2 + $0x10] sm:$0xff]  ;;  %v130_v5 = vand.u32 2147483647, %v1040_v1 }
  0x15   :  { %v133_v6 = vand.u32 2139095040, %v1040_v1  ;;  %v236_v11 = vand.u32 2139095040, %v1044_v4  ;;  %v233_v24 = vand.u32 2147483647, %v1044_v4  ;;  %v1008_v32 = vmov 2475754826  }
  0x16   :  { %v31_v7 = vshrl.u32 %v30_v3, 23  ;;  %v34_v8 = vand.u32 8388607, %v27_v2  ;;  %v137_v10 = vand.u32 8388607, %v130_v5  ;;  %s1013_s0 = smov [#allocation5]  }
  0x17   :  { %v134_v9 = vshrl.u32 %v133_v6, 23  ;;  %v237_v14 = vshrl.u32 %v236_v11, 23  ;;  %v1009_v34 = vmov 2131351028   ;;  %v1010_v36 = vmov 2102212464  }
  0x18   :  { %v880_v12 = vadd.s32 4294967169, %v31_v7  ;;  %v35_v16 = vor.u32 8388608, %v34_v8  ;;  %v138_v17 = vor.u32 8388608, %v137_v10  ;;  %v1011_v38 = vmov 920167782   ;;  %s868_s20 = sshll.u32 %s1013_s0, 4  ;;  %s869_s20 = int_to_ptr.vmem [resolvable:$true] %s868_s20 }
  0x19   :  { %v884_v13 = vadd.s32 4294967169, %v134_v9  ;;  %v888_v19 = vadd.s32 4294967169, %v237_v14  ;;  %v1012_v46 = vmov 1326507024   ;;  %s978_s21 = scalar_lea.vmem %s869_s20, 1024  ;;  %p983_p9 = scmp.lt.s32.totalorder %s869_s20, %s869_s20 }
  0x1a   :  { %v37_v15 = vadd.s32 1, %v880_v12  ;;  %v1054_v25 = vshll.u32 %v35_v16, 8  ;;  %v1056_v27 = vshll.u32 %v138_v17, 8  ;;  %p979_p8 = scmp.ne.s32.totalorder %s869_s20, %s978_s21  ;;  %p984_p10 = scmp.lt.s32.totalorder %s978_s21, %s978_s21 }
  0x1b   :  { %v140_v18 = vadd.s32 1, %v884_v13  ;;  %v1058_v28 = vadd.s32 1, %v888_v19 }
  0x1c   :  { %vm38_vm0 = vcmp.gt.s32.totalorder %v37_v15, 0  ;;  %p985_p11 = por %p984_p10, %p983_p9 }
  0x1d   :  { %v39_v20 = vsel %vm38_vm0, %v37_v15, 0  ;;  %vm141_vm1 = vcmp.gt.s32.totalorder %v140_v18, 0  ;;  %vm244_vm6 = vcmp.gt.s32.totalorder %v1058_v28, 0  ;;  %vm29_vm0 = vcmp.lt.s32.totalorder %v1038_v0, 0 }
  0x1e   :  { %v40_v21 = vshrl.u32 %v39_v20, 5  ;;  %v41_v22 = vand.u32 31, %v39_v20  ;;  %v142_v23 = vsel %vm141_vm1, %v140_v18, 0  ;;  %p986_p12 = pnand %p985_p11, %p979_p8 }
  0x1f   :  { %v144_v26 = vand.u32 31, %v142_v23  ;;  %v1065_v40 = vshrl.u32 %v142_v23, 5 }
  0x20   :  { %v42_v29 = vsub.s32 32, %v41_v22  ;;  %v44_v31 = vshll.u32 %v1007_v30, %v41_v22  ;;  %v47_v33 = vshll.u32 %v1008_v32, %v41_v22  ;;  %v50_v35 = vshll.u32 %v1009_v34, %v41_v22 }
  0x21   :  { %v53_v37 = vshll.u32 %v1010_v36, %v41_v22  ;;  %v56_v39 = vshll.u32 %v1011_v38, %v41_v22  ;;  %vm59_vm2 = vcmp.lt.s32.totalorder %v40_v21, 1  ;;  %vm60_vm3 = vcmp.lt.s32.totalorder %v40_v21, 2 }
  0x22   :  { %v43_v41 = vshrl.u32 %v1007_v30, %v42_v29  ;;  %v45_v42 = vshrl.u32 %v1008_v32, %v42_v29  ;;  %v48_v43 = vshrl.u32 %v1009_v34, %v42_v29  ;;  %v51_v44 = vshrl.u32 %v1010_v36, %v42_v29 }
  0x23   :  { %v54_v45 = vshrl.u32 %v1011_v38, %v42_v29  ;;  %v57_v47 = vshrl.u32 %v1012_v46, %v42_v29  ;;  %vm62_vm4 = vcmp.lt.s32.totalorder %v40_v21, 4  ;;  %v145_v51 = vsub.s32 32, %v144_v26 }
  0x24   :  { %v46_v48 = vor.u32 %v45_v42, %v44_v31  ;;  %v49_v49 = vor.u32 %v48_v43, %v47_v33  ;;  %v52_v50 = vor.u32 %v51_v44, %v50_v35  ;;  %vm61_vm5 = vcmp.lt.s32.totalorder %v40_v21, 3 }
  0x25   :  { %v55_v52 = vor.u32 %v54_v45, %v53_v37  ;;  %v58_v53 = vor.u32 %v57_v47, %v56_v39  ;;  %v147_v54 = vshll.u32 %v1007_v30, %v144_v26  ;;  %v150_v62 = vshll.u32 %v1008_v32, %v144_v26 }
  0x26   :  { %v63_v55 = vsel %vm59_vm2, %v43_v41, %v46_v48  ;;  %v64_v56 = vsel %vm62_vm4, %v52_v50, 2102212464  ;;  %v67_v57 = vsel %vm59_vm2, %v46_v48, %v49_v49  ;;  %v71_v58 = vsel %vm59_vm2, %v49_v49, %v52_v50 }
  0x27   :  { %v65_v59 = vsel %vm61_vm5, %v49_v49, %v64_v56  ;;  %v68_v60 = vsel %vm62_vm4, %v55_v52, 920167782  ;;  %v72_v61 = vsel %vm62_vm4, %v58_v53, 1326507024  ;;  %v146_v6 = vshrl.u32 %v1007_v30, %v145_v51 }
  0x28   :  { %v69_v63 = vsel %vm61_vm5, %v52_v50, %v68_v60  ;;  %v73_v3 = vsel %vm61_vm5, %v55_v52, %v72_v61  ;;  %v148_v7 = vshrl.u32 %v1008_v32, %v145_v51  ;;  %v66_v8 = vsel %vm60_vm3, %v63_v55, %v65_v59  ;;  %v1129_v60 = vld [vmem:[#allocation2 + $0x18] sm:$0xff] }
  0x29   :  { %v70_v9 = vsel %vm60_vm3, %v67_v57, %v69_v63  ;;  %v74_v10 = vsel %vm60_vm3, %v71_v58, %v73_v3  ;;  %v151_v11 = vshrl.u32 %v1009_v34, %v145_v51  ;;  %v153_v18 = vshll.u32 %v1009_v34, %v144_v26 }
  0x2a   :  { %v1086_v12 = vmul.u32.u64.low %v1054_v25, %v74_v10  ;;  %v1087_v13 = vmul.u32.u64.high %v1054_v25, %v74_v10, %v1086_v12  ;;  %v1090_v14 = vmul.u32.u64.low %v1054_v25, %v70_v9  ;;  %v1091_v15 = vmul.u32.u64.high %v1054_v25, %v70_v9, %v1090_v14 }
  0x2b   :  { %v149_v16 = vor.u32 %v148_v7, %v147_v54  ;;  %v152_v17 = vor.u32 %v151_v11, %v150_v62  ;;  %v154_v19 = vshrl.u32 %v1010_v36, %v145_v51  ;;  %v156_v20 = vshll.u32 %v1010_v36, %v144_v26 }
  0x2c   :  { %v157_v21 = vshrl.u32 %v1011_v38, %v145_v51  ;;  %v159_v22 = vshll.u32 %v1011_v38, %v144_v26  ;;  %v160_v23 = vshrl.u32 %v1012_v46, %v145_v51  ;;  %v82_v29 = vmul.u32 %v1054_v25, %v66_v8 }
  0x2d   :  { %v155_v31 = vor.u32 %v154_v19, %v153_v18  ;;  %vm162_vm7 = vcmp.lt.s32.totalorder %v1065_v40, 1  ;;  %vm163_vm8 = vcmp.lt.s32.totalorder %v1065_v40, 2  ;;  %vm84_vm9 = vc.u32 %v1087_v13, %v1090_v14 }
  0x2e   :  { %v85_v33 = vadd.s32 1, %v1091_v15  ;;  %v158_v35 = vor.u32 %v157_v21, %v156_v20  ;;  %vm164_vm10 = vcmp.lt.s32.totalorder %v1065_v40, 3  ;;  %v161_v37 = vor.u32 %v160_v23, %v159_v22 }
  0x2f   :  { %vm165_vm11 = vcmp.lt.s32.totalorder %v1065_v40, 4  ;;  %v166_v26 = vsel %vm162_vm7, %v146_v6, %v149_v16  ;;  %v170_v39 = vsel %vm162_vm7, %v149_v16, %v152_v17  ;;  %v174_v43 = vsel %vm162_vm7, %v152_v17, %v155_v31 }
  0x30   :  { %v86_v25 = vsel %vm84_vm9, %v85_v33, %v1091_v15  ;;  %v167_v41 = vsel %vm165_vm11, %v155_v31, 2102212464  ;;  %v171_v42 = vsel %vm165_vm11, %v158_v35, 920167782  ;;  %v175_v48 = vsel %vm165_vm11, %v161_v37, 1326507024 }
  0x31   :  { %v87_v44 = vadd.s32 %v86_v25, %v82_v29  ;;  %v168_v45 = vsel %vm164_vm10, %v152_v17, %v167_v41  ;;  %v172_v47 = vsel %vm164_vm10, %v155_v31, %v171_v42  ;;  %v176_v51 = vsel %vm164_vm10, %v158_v35, %v175_v48 }
  0x32   :  { %v169_v49 = vsel %vm163_vm8, %v166_v26, %v168_v45  ;;  %v173_v50 = vsel %vm163_vm8, %v170_v39, %v172_v47  ;;  %v245_v52 = vsel %vm244_vm6, %v1058_v28, 0  ;;  %v177_v54 = vsel %vm163_vm8, %v174_v43, %v176_v51 }
  0x33   :  { %v88_v53 = vadd.s32 536870912, %v87_v44  ;;  %v1119_v55 = vmul.u32.u64.low %v1056_v27, %v173_v50  ;;  %v1120_v56 = vmul.u32.u64.high %v1056_v27, %v173_v50, %v1119_v55  ;;  %v240_v59 = vand.u32 8388607, %v233_v24 }
  0x34   :  { %v1124_v57 = vmul.u32.u64.low %v1056_v27, %v177_v54  ;;  %v1125_v58 = vmul.u32.u64.high %v1056_v27, %v177_v54, %v1124_v57  ;;  %v247_v28 = vand.u32 31, %v245_v52  ;;  %v336_v40 = vand.u32 2147483647, %v1129_v60 }
  0x35   :  { %v1131_v61 = vshrl.u32 %v88_v53, 30  ;;  %v185_v62 = vmul.u32 %v1056_v27, %v169_v49  ;;  %v188_v3 = vadd.s32 1, %v1120_v56  ;;  %v241_v7 = vor.u32 8388608, %v240_v59 }
  0x36   :  { %v248_v6 = vsub.s32 32, %v247_v28  ;;  %vm187_vm12 = vc.u32 %v1125_v58, %v1119_v55  ;;  %v339_v8 = vand.u32 2139095040, %v1129_v60  ;;  %v1143_v11 = vshrl.u32 %v245_v52, 5 }
  0x37   :  { %v90_v63 = vshll.u32 %v1131_v61, 30  ;;  %v189_v10 = vsel %vm187_vm12, %v188_v3, %v1120_v56  ;;  %v1147_v27 = vand.u32 8388607, %v336_v40  ;;  %v250_v15 = vshll.u32 %v1007_v30, %v247_v28 }
  0x38   :  { %v190_v12 = vadd.s32 %v189_v10, %v185_v62  ;;  %v251_v16 = vshrl.u32 %v1008_v32, %v248_v6  ;;  %v253_v17 = vshll.u32 %v1008_v32, %v247_v28  ;;  %v254_v19 = vshrl.u32 %v1009_v34, %v248_v6 }
  0x39   :  { %v1140_v9 = vsub.s32 %v87_v44, %v90_v63  ;;  %v256_v20 = vshll.u32 %v1009_v34, %v247_v28  ;;  %v257_v21 = vshrl.u32 %v1010_v36, %v248_v6  ;;  %v259_v23 = vshll.u32 %v1010_v36, %v247_v28 }
  0x3a   :  { %v191_v22 = vadd.s32 536870912, %v190_v12  ;;  %v1157_v29 = vshll.u32 %v241_v7, 8  ;;  %v340_v31 = vshrl.u32 %v339_v8, 23  ;;  %v83_v33 = vadd.s32 %v1090_v14, %v1087_v13 }
  0x3b   :  { %v93_v18 = vsub.s32 0, %v1140_v9  ;;  %v249_v37 = vshrl.u32 %v1007_v30, %v248_v6  ;;  %vm268_vm13 = vcmp.lt.s32.totalorder %v1143_v11, 4  ;;  %v252_v39 = vor.u32 %v251_v16, %v250_v15 }
  0x3c   :  { %v192_v26 = vshrl.u32 %v191_v22, 30  ;;  %v260_v25 = vshrl.u32 %v1011_v38, %v248_v6  ;;  %v262_v41 = vshll.u32 %v1011_v38, %v247_v28  ;;  %v255_v43 = vor.u32 %v254_v19, %v253_v17 }
  0x3d   :  { %v881_v35 = vmin.u32 %v93_v18, %v1140_v9  ;;  %v258_v44 = vor.u32 %v257_v21, %v256_v20  ;;  %v263_v45 = vshrl.u32 %v1012_v46, %v248_v6  ;;  %vm265_vm14 = vcmp.lt.s32.totalorder %v1143_v11, 1 }
  0x3e   :  { %v193_v47 = vshll.u32 %v192_v26, 30  ;;  %v261_v48 = vor.u32 %v260_v25, %v259_v23  ;;  %vm267_vm15 = vcmp.lt.s32.totalorder %v1143_v11, 3  ;;  %v892_v50 = vadd.s32 4294967169, %v340_v31 }
  0x3f   :  { %v95_v42 = vclz %v881_v35  ;;  %v264_v14 = vor.u32 %v263_v45, %v262_v41  ;;  %v270_v49 = vsel %vm268_vm13, %v258_v44, 2102212464  ;;  %vm266_vm1 = vcmp.lt.s32.totalorder %v1143_v11, 2 }
  0x40   :  { %v1172_v51 = vsub.s32 %v190_v12, %v193_v47  ;;  %v269_v52 = vsel %vm265_vm14, %v249_v37, %v252_v39  ;;  %v274_v53 = vsel %vm268_vm13, %v261_v48, 920167782  ;;  %vm132_vm3 = vcmp.lt.s32.totalorder %v1040_v1, 0 }
  0x41   :  { %v882_v13 = vadd.s32 4294967294, %v95_v42  ;;  %v273_v54 = vsel %vm265_vm14, %v252_v39, %v255_v43  ;;  %v275_v56 = vsel %vm267_vm15, %v258_v44, %v274_v53  ;;  %v278_v57 = vsel %vm268_vm13, %v264_v14, 1326507024 }
  0x42   :  { %v196_v28 = vsub.s32 0, %v1172_v51  ;;  %v271_v62 = vsel %vm267_vm15, %v255_v43, %v270_v49  ;;  %v277_v63 = vsel %vm265_vm14, %v255_v43, %v258_v44  ;;  %vm1193_vm4 = vcmp.le.f32.partialorder %v27_v2, 0.7853982 }
  0x43   :  { %vm883_vm2 = vcmp.lt.s32.totalorder %v882_v13, 0  ;;  %v279_v10 = vsel %vm267_vm15, %v261_v48, %v278_v57  ;;  %v113_v12 = vsub.s32 4, %v1131_v61  ;;  %v216_v16 = vsub.s32 4, %v192_v26 }
  0x44   :  { %v98_v59 = vsel %vm883_vm2, 0, %v882_v13  ;;  %v885_v15 = vmin.u32 %v196_v28, %v1172_v51  ;;  %v276_v17 = vsel %vm266_vm1, %v273_v54, %v275_v56  ;;  %vm1206_vm5 = vcmp.le.f32.partialorder %v130_v5, 0.7853982 }
  0x45   :  { %v99_v6 = vsub.s32 32, %v98_v59  ;;  %v100_v7 = vshll.u32 %v1140_v9, %v98_v59  ;;  %v103_v8 = vsub.s32 4294967266, %v98_v59  ;;  %v272_v9 = vsel %vm266_vm1, %v269_v52, %v271_v62 }
  0x46   :  { %v280_v20 = vsel %vm266_vm1, %v277_v63, %v279_v10  ;;  %v198_v21 = vclz %v885_v15  ;;  %v346_v31 = vadd.s32 1, %v892_v50  ;;  %v186_v39 = vadd.s32 %v1119_v55, %v1125_v58 }
  0x47   :  { %v101_v18 = vshrl.u32 %v83_v33, %v99_v6  ;;  %v104_v2 = vadd.s32 127, %v103_v8  ;;  %v1215_v22 = vmul.u32.u64.low %v1157_v29, %v280_v20  ;;  %v1216_v23 = vmul.u32.u64.high %v1157_v29, %v280_v20, %v1215_v22 }
  0x48   :  { %v1219_v37 = vmul.u32.u64.low %v1157_v29, %v276_v17  ;;  %v1220_v5 = vmul.u32.u64.high %v1157_v29, %v276_v17, %v1219_v37  ;;  %v886_v25 = vadd.s32 4294967294, %v198_v21  ;;  %v344_v11 = vor.u32 8388608, %v1147_v27 }
  0x49   :  { %v102_v33 = vor.u32 %v101_v18, %v100_v7  ;;  %v105_v35 = vshll.u32 %v104_v2, 23  ;;  %vm347_vm6 = vcmp.gt.s32.totalorder %v346_v31, 0  ;;  %v114_v43 = vsel %vm29_vm0, %v113_v12, %v1131_v61 }
  0x4a   :  { %v348_v44 = vsel %vm347_vm6, %v346_v31, 0  ;;  %vm887_vm7 = vcmp.lt.s32.totalorder %v886_v25, 0  ;;  %v217_v45 = vsel %vm132_vm3, %v216_v16, %v192_v26  ;;  %v288_v47 = vmul.u32 %v1157_v29, %v272_v9 }
  0x4b   :  { %v106_v41 = vor.u32 4788187, %v105_v35  ;;  %v109_v42 = vcvt.s32.f32 %v102_v33  ;;  %vm290_vm8 = vc.u32 %v1216_v23, %v1219_v37  ;;  %v201_v58 = vsel %vm887_vm7, 0, %v886_v25 }
  0x4c   :  { %v291_v48 = vadd.s32 1, %v1220_v5  ;;  %v350_v13 = vand.u32 31, %v348_v44  ;;  %v116_v14 = vsel %vm1193_vm4, 0, %v114_v43  ;;  %v202_v49 = vsub.s32 32, %v201_v58 }
  0x4d   :  { %v107_v55 = vand.u32 2147483647, %v106_v41  ;;  %v203_v61 = vshll.u32 %v1172_v51, %v201_v58  ;;  %v206_v50 = vsub.s32 4294967266, %v201_v58  ;;  %v1238_v53 = vand.u32 3, %v116_v14 }
  0x4e   :  { %v292_v29 = vsel %vm290_vm8, %v291_v48, %v1220_v5  ;;  %v351_v26 = vsub.s32 32, %v350_v13  ;;  %v204_v54 = vshrl.u32 %v186_v39, %v202_v49  ;;  %v1243_v57 = vsel %vm1206_vm5, 0, %v217_v45 }
  0x4f   :  { %v110_v52 = vmul.f32 %v109_v42, %v107_v55  ;;  %v207_v56 = vadd.s32 127, %v206_v50  ;;  %v293_v59 = vadd.s32 %v292_v29, %v288_v47  ;;  %v1245_v62 = vshrl.u32 %v348_v44, 5 }
  0x50   :  { %v353_v63 = vshll.u32 %v1007_v30, %v350_v13  ;;  %v356_v51 = vshll.u32 %v1008_v32, %v350_v13  ;;  %v205_v6 = vor.u32 %v204_v54, %v203_v61  ;;  %v354_v10 = vshrl.u32 %v1008_v32, %v351_v26 }
  0x51   :  { %v111_v28 = vxor.u32 2147483648, %v110_v52  ;;  %v208_v7 = vshll.u32 %v207_v56, 23  ;;  %v294_v8 = vadd.s32 536870912, %v293_v59  ;;  %v357_v15 = vshrl.u32 %v1009_v34, %v351_v26 }
  0x52   :  { %v359_v16 = vshll.u32 %v1009_v34, %v350_v13  ;;  %v360_v17 = vshrl.u32 %v1010_v36, %v351_v26  ;;  %v212_v9 = vcvt.s32.f32 %v205_v6  ;;  %v352_v32 = vshrl.u32 %v1007_v30, %v351_v26 }
  0x53   :  { %v112_v12 = vsel %vm29_vm0, %v111_v28, %v110_v52  ;;  %v209_v2 = vor.u32 4788187, %v208_v7  ;;  %v1258_v20 = vshrl.u32 %v294_v8, 30  ;;  %v362_v21 = vshll.u32 %v1010_v36, %v350_v13 }
  0x54   :  { %v115_v18 = vsel %vm1193_vm4, %v1038_v0, %v112_v12  ;;  %v363_v22 = vshrl.u32 %v1011_v38, %v351_v26  ;;  %v355_v33 = vor.u32 %v354_v10, %v353_v63  ;;  %vm125_vm9 = vcmp.eq.s32.totalorder %v1238_v53, 2 }
  0x55   :  { %940 = vcosq.f32 %v115_v18  ;;  %v210_v31 = vand.u32 2147483647, %v209_v2  ;;  %v296_v34 = vshll.u32 %v1258_v20, 30  ;;  %v358_v3 = vor.u32 %v357_v15, %v356_v51 }
  0x56   :  { %942 = vsinq.f32 %v115_v18  ;;  %v364_v35 = vor.u32 %v363_v22, %v362_v21  ;;  %v365_v5 = vshll.u32 %v1011_v38, %v350_v13  ;;  %v366_v39 = vshrl.u32 %v1012_v46, %v351_v26 }
  0x57   :  { %v213_v25 = vmul.f32 %v212_v9, %v210_v31  ;;  %v1267_v41 = vsub.s32 %v293_v59, %v296_v34  ;;  %v361_v30 = vor.u32 %v360_v17, %v359_v16  ;;  %vm368_vm10 = vcmp.lt.s32.totalorder %v1245_v62, 1 }
  0x58   :  { %vm121_vm11 = vcmp.lt.s32.totalorder %v1238_v53, 2  ;;  %v367_v36 = vor.u32 %v366_v39, %v365_v5  ;;  %vm370_vm12 = vcmp.lt.s32.totalorder %v1245_v62, 3  ;;  %vm371_vm13 = vcmp.lt.s32.totalorder %v1245_v62, 4 }
  0x59   :  { %v384_v42 = vshll.u32 %v344_v11, 8  ;;  %vm119_vm14 = vweird.f32 %v1038_v0  ;;  %v214_v38 = vxor.u32 2147483648, %v213_v25  ;;  %v299_v46 = vsub.s32 0, %v1267_v41 }
  0x5a   :  { %v372_v43 = vsel %vm368_vm10, %v352_v32, %v355_v33  ;;  %v373_v44 = vsel %vm371_vm13, %v361_v30, 2102212464  ;;  %vm369_vm15 = vcmp.lt.s32.totalorder %v1245_v62, 2  ;;  %v376_v27 = vsel %vm368_vm10, %v355_v33, %v358_v3 }
  0x5b   :  { %v374_v45 = vsel %vm370_vm12, %v358_v3, %v373_v44  ;;  %v377_v11 = vsel %vm371_vm13, %v364_v35, 920167782  ;;  %v215_v47 = vsel %vm132_vm3, %v214_v38, %v213_v25  ;;  %v1291_v55 = vand.u32 3, %v1243_v57 }
  0x5c   :  { %v889_v58 = vmin.u32 %v299_v46, %v1267_v41  ;;  %v536_v48 = vadd.s32 3, %v116_v14  ;;  %v218_v13 = vsel %vm1206_vm5, %v1040_v1, %v215_v47  ;;  %v375_v49 = vsel %vm369_vm15, %v372_v43, %v374_v45 }
  0x5d   :  { %v378_v61 = vsel %vm370_vm12, %v361_v30, %v377_v11  ;;  %v380_v50 = vsel %vm368_vm10, %v358_v3, %v361_v30  ;;  %944 = vcosq.f32 %v218_v13  ;;  %v381_v14 = vsel %vm371_vm13, %v367_v36, 1326507024 }
  0x5e   :  { %v301_v52 = vclz %v889_v58  ;;  %v379_v29 = vsel %vm369_vm15, %v376_v27, %v378_v61  ;;  %946 = vsinq.f32 %v218_v13  ;;  %v382_v19 = vsel %vm370_vm12, %v364_v35, %v381_v14 }
  0x5f   :  { %v941_v26 = vpop.eup %940  ;;  %v1309_v54 = vmul.u32.u64.low %v384_v42, %v379_v29  ;;  %v1310_v56 = vmul.u32.u64.high %v384_v42, %v379_v29, %v1309_v54  ;;  %vm122_vm0 = vcmp.eq.s32.totalorder %v1238_v53, 0  ;;  %v383_v51 = vsel %vm369_vm15, %v380_v50, %v382_v19 }
  0x60   :  { %v943_v59 = vpop.eup %942  ;;  %v126_v28 = vxor.u32 2147483648, %v941_v26  ;;  %v890_v63 = vadd.s32 4294967294, %v301_v52  ;;  %vm225_vm1 = vcmp.eq.s32.totalorder %v1291_v55, 0  ;;  %v537_v10 = vand.u32 3, %v536_v48 }
  0x61   :  { %v123_v6 = vxor.u32 2147483648, %v943_v59  ;;  %v1317_v7 = vmul.u32.u64.low %v384_v42, %v383_v51  ;;  %v1318_v8 = vmul.u32.u64.high %v384_v42, %v383_v51, %v1317_v7  ;;  %vm224_vm2 = vcmp.lt.s32.totalorder %v1291_v55, 2 }
  0x62   :  { %v127_v12 = vsel %vm125_vm9, %v126_v28, %v943_v59  ;;  %v289_v15 = vadd.s32 %v1219_v37, %v1216_v23  ;;  %vm891_vm3 = vcmp.lt.s32.totalorder %v890_v63, 0  ;;  %v391_v16 = vmul.u32 %v384_v42, %v375_v49 }
  0x63   :  { %v124_v17 = vsel %vm122_vm0, %v941_v26, %v123_v6  ;;  %vm222_vm4 = vweird.f32 %v1040_v1  ;;  %v304_v62 = vsel %vm891_vm3, 0, %v890_v63  ;;  %v394_v18 = vadd.s32 1, %v1310_v56 }
  0x64   :  { %v640_v2 = vadd.s32 3, %v1243_v57  ;;  %v128_v9 = vsel %vm121_vm11, %v124_v17, %v127_v12  ;;  %v305_v32 = vsub.s32 32, %v304_v62  ;;  %v306_v21 = vshll.u32 %v1267_v41, %v304_v62 }
  0x65   :  { %v309_v22 = vsub.s32 4294967266, %v304_v62  ;;  %v129_v23 = vsel %vm119_vm14, nan, %v128_v9  ;;  %vm393_vm5 = vc.u32 %v1318_v8, %v1309_v54  ;;  %vm538_vm6 = vcmp.lt.s32.totalorder %v537_v10, 2 }
  0x66   :  { %vm539_vm7 = vcmp.eq.s32.totalorder %v537_v10, 0  ;;  %439 = vst [vmem:[#allocation5] sm:$0xff] %v129_v23  ;;  %v307_v37 = vshrl.u32 %v289_v15, %v305_v32  ;;  %v395_v57 = vsel %vm393_vm5, %v394_v18, %v1310_v56  ;;  %vm228_vm8 = vcmp.eq.s32.totalorder %v1291_v55, 2 }
  0x67   :  { %v310_v31 = vadd.s32 127, %v309_v22  ;;  %v541_v34 = vsel %vm539_vm7, %v941_v26, %v123_v6  ;;  %v396_v53 = vadd.s32 %v395_v57, %v391_v16  ;;  %vm542_vm9 = vcmp.eq.s32.totalorder %v537_v10, 2  ;;  %v945_v3 = vpop.eup %944 }
  0x68   :  { %v641_v33 = vand.u32 3, %v640_v2  ;;  %v308_v35 = vor.u32 %v307_v37, %v306_v21  ;;  %v319_v39 = vsub.s32 4, %v1258_v20  ;;  %v544_v25 = vsel %vm542_vm9, %v126_v28, %v943_v59  ;;  %v947_v41 = vpop.eup %946 }
  0x69   :  { %v311_v5 = vshll.u32 %v310_v31, 23  ;;  %v229_v30 = vxor.u32 2147483648, %v945_v3  ;;  %v397_v36 = vadd.s32 536870912, %v396_v53  ;;  %v545_v42 = vsel %vm538_vm6, %v541_v34, %v544_v25 }
  0x6a   :  { %vm642_vm10 = vcmp.lt.s32.totalorder %v641_v33, 2  ;;  %v226_v38 = vxor.u32 2147483648, %v947_v41  ;;  %v315_v43 = vcvt.s32.f32 %v308_v35  ;;  %v546_v44 = vsel %vm119_vm14, nan, %v545_v42 }
  0x6b   :  { %v312_v46 = vor.u32 4788187, %v311_v5  ;;  %v230_v45 = vsel %vm228_vm8, %v229_v30, %v947_v41  ;;  %v1343_v27 = vshrl.u32 %v397_v36, 30  ;;  %859 = vst [vmem:[#allocation5 + $0x8] sm:$0xff] %v546_v44  ;;  %vm643_vm11 = vcmp.eq.s32.totalorder %v641_v33, 0 }
  0x6c   :  { %vm646_vm12 = vcmp.eq.s32.totalorder %v641_v33, 2  ;;  %v227_v11 = vsel %vm225_vm1, %v945_v3, %v226_v38  ;;  %v645_v58 = vsel %vm643_vm11, %v945_v3, %v226_v38  ;;  %vm235_vm13 = vcmp.lt.s32.totalorder %v1044_v4, 0 }
  0x6d   :  { %v313_v47 = vand.u32 2147483647, %v312_v46  ;;  %v648_v48 = vsel %vm646_vm12, %v229_v30, %v947_v41  ;;  %v231_v13 = vsel %vm224_vm2, %v227_v11, %v230_v45  ;;  %v399_v0 = vshll.u32 %v1343_v27, 30 }
  0x6e   :  { %v649_v49 = vsel %vm642_vm10, %v645_v58, %v648_v48  ;;  %v232_v61 = vsel %vm222_vm4, nan, %v231_v13  ;;  %vm234_vm14 = vcmp.le.f32.partialorder %v233_v24, 0.7853982  ;;  %v320_v14 = vsel %vm235_vm13, %v319_v39, %v1258_v20 }
  0x6f   :  { %v316_v50 = vmul.f32 %v315_v43, %v313_v47  ;;  %v650_v52 = vsel %vm222_vm4, nan, %v649_v49  ;;  %440 = vst [vmem:[#allocation5 + $0x10] sm:$0xff] %v232_v61  ;;  %v400_v29 = vsub.s32 %v396_v53, %v399_v0  ;;  %v322_v59 = vsel %vm234_vm14, 0, %v320_v14 }
  0x70   :  { %860 = vst [vmem:[#allocation5 + $0x18] sm:$0xff] %v650_v52  ;;  %v744_v63 = vadd.s32 3, %v322_v59  ;;  %v392_v6 = vadd.s32 %v1309_v54, %v1318_v8  ;;  %v326_v7 = vand.u32 3, %v322_v59  ;;  %vm325_vm4 = vweird.f32 %v1044_v4 }
  0x71   :  { %v317_v55 = vxor.u32 2147483648, %v316_v50  ;;  %v402_v26 = vsub.s32 0, %v400_v29  ;;  %v422_v53 = vsub.s32 4, %v1343_v27  ;;  %vm338_vm7 = vcmp.lt.s32.totalorder %v1129_v60, 0 }
  0x72   :  { %v745_v10 = vand.u32 3, %v744_v63  ;;  %vm328_vm0 = vcmp.eq.s32.totalorder %v326_v7, 0  ;;  %vm331_vm1 = vcmp.eq.s32.totalorder %v326_v7, 2  ;;  %vm327_vm5 = vcmp.lt.s32.totalorder %v326_v7, 2 }
  0x73   :  { %v318_v19 = vsel %vm235_vm13, %v317_v55, %v316_v50  ;;  %v893_v28 = vmin.u32 %v402_v26, %v400_v29  ;;  %vm337_vm8 = vcmp.le.f32.partialorder %v336_v40, 0.7853982  ;;  %v423_v39 = vsel %vm338_vm7, %v422_v53, %v1343_v27 }
  0x74   :  { %v321_v56 = vsel %vm234_vm14, %v1044_v4, %v318_v19  ;;  %vm750_vm2 = vcmp.eq.s32.totalorder %v745_v10, 2  ;;  %vm747_vm3 = vcmp.eq.s32.totalorder %v745_v10, 0  ;;  %vm746_vm6 = vcmp.lt.s32.totalorder %v745_v10, 2 }
  0x75   :  { %948 = vcosq.f32 %v321_v56  ;;  %v404_v1 = vclz %v893_v28  ;;  %v425_v30 = vsel %vm337_vm8, 0, %v423_v39 }
  0x76   :  { %950 = vsinq.f32 %v321_v56  ;;  %v848_v36 = vadd.s32 3, %v425_v30  ;;  %v429_v42 = vand.u32 3, %v425_v30 }
  0x77   :  { %v894_v51 = vadd.s32 4294967294, %v404_v1 }
  0x78   :  { %v849_v38 = vand.u32 3, %v848_v36  ;;  %vm434_vm9 = vcmp.eq.s32.totalorder %v429_v42, 2  ;;  %vm431_vm11 = vcmp.eq.s32.totalorder %v429_v42, 0  ;;  %vm430_vm13 = vcmp.lt.s32.totalorder %v429_v42, 2 }
  0x79   :  { %vm895_vm15 = vcmp.lt.s32.totalorder %v894_v51, 0 }
  0x7a   :  { %v407_v24 = vsel %vm895_vm15, 0, %v894_v51  ;;  %vm854_vm10 = vcmp.eq.s32.totalorder %v849_v38, 2  ;;  %vm851_vm12 = vcmp.eq.s32.totalorder %v849_v38, 0  ;;  %vm850_vm14 = vcmp.lt.s32.totalorder %v849_v38, 2 }
  0x7b   :  { %v408_v12 = vsub.s32 32, %v407_v24  ;;  %v409_v20 = vshll.u32 %v400_v29, %v407_v24  ;;  %v412_v15 = vsub.s32 4294967266, %v407_v24  ;;  %vm428_vm15 = vweird.f32 %v1129_v60 }
  0x7d   :  { %v410_v16 = vshrl.u32 %v392_v6, %v408_v12  ;;  %v413_v17 = vadd.s32 127, %v412_v15 }
  0x7f   :  { %v949_v62 = vpop.eup %948  ;;  %v411_v9 = vor.u32 %v410_v16, %v409_v20  ;;  %v414_v32 = vshll.u32 %v413_v17, 23 }
  0x80   :  { %v951_v18 = vpop.eup %950  ;;  %v332_v2 = vxor.u32 2147483648, %v949_v62 }
  0x81   :  { %v329_v54 = vxor.u32 2147483648, %v951_v18  ;;  %v415_v21 = vor.u32 4788187, %v414_v32  ;;  %v418_v22 = vcvt.s32.f32 %v411_v9 }
  0x82   :  { %v333_v8 = vsel %vm331_vm1, %v332_v2, %v951_v18  ;;  %v752_v23 = vsel %vm750_vm2, %v332_v2, %v951_v18 }
  0x83   :  { %v330_v37 = vsel %vm328_vm0, %v949_v62, %v329_v54  ;;  %v749_v31 = vsel %vm747_vm3, %v949_v62, %v329_v54  ;;  %v416_v34 = vand.u32 2147483647, %v415_v21 }
  0x84   :  { %v334_v57 = vsel %vm327_vm5, %v330_v37, %v333_v8  ;;  %v753_v33 = vsel %vm746_vm6, %v749_v31, %v752_v23 }
  0x85   :  { %v335_v3 = vsel %vm325_vm4, nan, %v334_v57  ;;  %v754_v35 = vsel %vm325_vm4, nan, %v753_v33  ;;  %v419_v5 = vmul.f32 %v418_v22, %v416_v34 }
  0x86   :  { %441 = vst [vmem:[#allocation5 + $0x20] sm:$0xff] %v335_v3  ;;  %861 = vst [vmem:[#allocation5 + $0x28] sm:$0xff] %v754_v35 }
  0x87   :  { %v420_v4 = vxor.u32 2147483648, %v419_v5 }
  0x89   :  { %v421_v25 = vsel %vm338_vm7, %v420_v4, %v419_v5 }
  0x8a   :  { %v424_v41 = vsel %vm337_vm8, %v1129_v60, %v421_v25 }
  0x8b   :  { %952 = vcosq.f32 %v424_v41 }
  0x8c   :  { %954 = vsinq.f32 %v424_v41 }
  0x95   :  { %v953_v46 = vpop.eup %952 }
  0x96   :  { %v955_v43 = vpop.eup %954  ;;  %v435_v44 = vxor.u32 2147483648, %v953_v46 }
  0x97   :  { %v432_v40 = vxor.u32 2147483648, %v955_v43 }
  0x98   :  { %v436_v45 = vsel %vm434_vm9, %v435_v44, %v955_v43  ;;  %v856_v27 = vsel %vm854_vm10, %v435_v44, %v955_v43 }
  0x99   :  { %v433_v11 = vsel %vm431_vm11, %v953_v46, %v432_v40  ;;  %v853_v47 = vsel %vm851_vm12, %v953_v46, %v432_v40 }
  0x9a   :  { %v437_v58 = vsel %vm430_vm13, %v433_v11, %v436_v45  ;;  %v857_v48 = vsel %vm850_vm14, %v853_v47, %v856_v27 }
  0x9b   :  { %v438_v13 = vsel %vm428_vm15, nan, %v437_v58  ;;  %v858_v0 = vsel %vm428_vm15, nan, %v857_v48 }
  0x9c   :  { %442 = vst [vmem:[#allocation5 + $0x30] sm:$0xff] %v438_v13  ;;  %862 = vst [vmem:[#allocation5 + $0x38] sm:$0xff] %v858_v0 }
  0x9d   :  { %989 = shalt.err (!%p986_p12)
}
  0x9e   :  { %s990_s24 = scalar_lea.hbm %s1384_s1, 1024 }
  0x9f   :  { %p991_p13 = scmp.ne.s32.totalorder %s1384_s1, %s990_s24  ;;  %p994_p0 = scmp.lt.u32.totalorder %s990_s24, %s1384_s1 }
  0xa1   :  { %p996_p1 = pnand %p994_p0, %p991_p13 }
  0xa3   :  { %999 = shalt.err (!%p996_p1)
}
  0xa4   :  { %s1014_s29 = smov 256   ;;  %s1015_s30 = smov 16  }
  0xa5   :  { %874 = dma.vmem_to_hbm [thread:$0]  %s869_s20, 1024, %s1384_s1, [#allocation4], %s1014_s29, %s1014_s29, %s1015_s30  }
  0xa6   :  { %1002 = dma.done.wait [#allocation4], 1024  }
  0xa7   :  { %1003 = vsyncadd [#allocation4], 4294966272 }
  0xa8   :  { %878 = vsyncpa [#allocation3], 1 }
  0xa9   :  { %879 = vsyncpa [#allocation4], 1 }

</bundles_post_ra>
